<compile_context>
chip_gen: v5e
topology: v5e:2x2
jax: 0.10.0
libtpu: 0.0.40
codegen_flags: <defaults>
</compile_context>

<pallas_src>
import math

import jax
import jax.numpy as jnp
import numpy as np
from jax import lax
from jax.experimental import pallas as pl
from jax.experimental.pallas import tpu as pltpu


# ----------------------------- Pallas kernel ------------------------------- #
def _concat_linear_kernel(x_ref, y_ref, wx_ref, wy_ref, b_ref, out_ref):
    """out = concat(x, y) @ [wx | wy].T + b   (one batch tile per grid step)

    x_ref:  [TB, Dh]   (bf16)
    y_ref:  [TB, Dh]   (bf16)
    wx_ref: [Op, Dh]   (bf16)  effective weight for the x half (mask applied)
    wy_ref: [Op, Dh]   (bf16)  effective weight for the y half (mask applied)
    b_ref:  [1,  Op]   (f32)
    out_ref:[TB, Op]   (f32)
    """
    # "NT" contraction: contract last dim of activations against last dim of
    # the [O, Dh] weight tile -> MXU-native, no XLU transpose.
    dn = (((1,), (1,)), ((), ()))
    acc = lax.dot_general(x_ref[...], wx_ref[...], dn,
                          preferred_element_type=jnp.float32)
    acc = acc + lax.dot_general(y_ref[...], wy_ref[...], dn,
                                preferred_element_type=jnp.float32)
    out_ref[...] = (acc + b_ref[...]).astype(out_ref.dtype)


def _round_up(v, m):
    return ((v + m - 1) // m) * m


def _pallas_concat_linear(x, y, w_x, w_y, b, *, block_b=512,
                          compute_dtype=jnp.bfloat16):
    """concat(x, y) @ [w_x | w_y].T + b  via a batch-tiled Pallas kernel.

    x, y : [B, Dh] f32      w_x, w_y : [O, Dh] f32      b : [O] f32
    returns [B, O] f32
    """
    B, Dh = x.shape
    O, Dh_w = w_x.shape
    assert Dh_w == Dh and w_y.shape == (O, Dh) and b.shape == (O,)

    # Lane-dense output: pad O up to a multiple of 128.
    O_pad = _round_up(O, 128)
    # Batch tile: multiple of 8 sublanes, capped (keeps VMEM bounded, well
    # inside the 64 MiB v7x budget even at Dh=512 / bf16 double-buffering).
    TB = min(block_b, _round_up(B, 8))
    B_pad = _round_up(B, TB)

    xp = jnp.pad(x.astype(compute_dtype), ((0, B_pad - B), (0, 0)))
    yp = jnp.pad(y.astype(compute_dtype), ((0, B_pad - B), (0, 0)))
    wxp = jnp.pad(w_x.astype(compute_dtype), ((0, O_pad - O), (0, 0)))
    wyp = jnp.pad(w_y.astype(compute_dtype), ((0, O_pad - O), (0, 0)))
    bp = jnp.pad(b.astype(jnp.float32), (0, O_pad - O)).reshape(1, O_pad)

    grid = (pl.cdiv(B_pad, TB),)

    out = pl.pallas_call(
        _concat_linear_kernel,
        out_shape=jax.ShapeDtypeStruct((B_pad, O_pad), jnp.float32),
        grid=grid,
        in_specs=[
            pl.BlockSpec((TB, Dh), lambda i: (i, 0)),      # x tile
            pl.BlockSpec((TB, Dh), lambda i: (i, 0)),      # y tile
            pl.BlockSpec((O_pad, Dh), lambda i: (0, 0)),   # w_x (resident)
            pl.BlockSpec((O_pad, Dh), lambda i: (0, 0)),   # w_y (resident)
            pl.BlockSpec((1, O_pad), lambda i: (0, 0)),    # bias (resident)
        ],
        out_specs=pl.BlockSpec((TB, O_pad), lambda i: (i, 0)),
        compiler_params=pltpu.CompilerParams(
            dimension_semantics=("parallel",),             # megacore on v7x
            vmem_limit_bytes=32 * 1024 * 1024,             # explicit, safe on v5e/v6e/v7x
        ),
    )(xp, yp, wxp, wyp, bp)

    return out[:B, :O]


# --------------------------- Module-level glue ------------------------------ #
class MaskConcatFusionPallas:
    """JAX/Pallas port of MaskConcatFusion."""

    def __init__(self, input_dim=1024, output_dim=31, key=jax.random.PRNGKey(0)):
        self.in_features = input_dim
        self.out_features = output_dim
        k_w, k_b, k_ex, k_ey = jax.random.split(key, 4)

        # nn.Linear-style init: U(-1/sqrt(in), 1/sqrt(in)); weight is [O, D].
        bound = 1.0 / math.sqrt(input_dim)
        self.fc_weight = jax.random.uniform(
            k_w, (output_dim, input_dim), jnp.float32, -bound, bound)
        self.fc_bias = jax.random.uniform(
            k_b, (output_dim,), jnp.float32, -bound, bound)

        # nn.Embedding-style init: N(0, 1); shape [D/2, O].
        half = input_dim // 2
        self.efc_x = jax.random.normal(k_ex, (half, output_dim), jnp.float32)
        self.efc_y = jax.random.normal(k_ey, (half, output_dim), jnp.float32)

    def mask(self, t, s, bias):
        # Tiny per-row sort + sigmoid over the [D/2, O] table; kept as JAX glue
        # (not a hot path).  Matches: sigmoid(s * (E + bias_e[:, None])).
        el = self.efc_x if t == 0 else self.efc_y            # [D/2, O]
        sort_el = jnp.sort(el, axis=1)                       # ascending, like torch.sort
        bias_idx = math.ceil(sort_el.shape[1] * bias) - 1
        bias_idx = min(max(bias_idx, 0), sort_el.shape[1] - 1)  # guard (same result for bias in (0, 1])
        bias_e = sort_el[:, bias_idx]                        # [D/2]
        return jax.nn.sigmoid(s * (el + bias_e[:, None]))    # [D/2, O]

    def forward(self, x, y, s=0, bias_x=0, bias_y=0, mask_ffn=False,
                training=False):
        Dh = self.in_features // 2
        w_x = self.fc_weight[:, :Dh]                         # [O, D/2]
        w_y = self.fc_weight[:, Dh:]                         # [O, D/2]

        if training and bias_x and bias_y and mask_ffn:
            mask_x = self.mask(0, s=s, bias=bias_x).T        # [O, D/2]
            mask_y = self.mask(1, s=s, bias=bias_y).T        # [O, D/2]
            # Returned exactly like the PyTorch module.
            adaptor = jnp.concatenate([mask_x, mask_y], axis=1)   # [O, D]
            # Hoisted once-per-call (f32 multiply, then bf16 inside wrapper).
            w_x_eff = mask_x * w_x
            w_y_eff = mask_y * w_y
            out = _pallas_concat_linear(x, y, w_x_eff, w_y_eff, self.fc_bias)
            return (None, adaptor, out)
        else:
            # Eval path: no all-ones adaptor, no extra O*D traffic.
            out = _pallas_concat_linear(x, y, w_x, w_y, self.fc_bias)
            return (None, None, out)


# ------------------------------- Reference ---------------------------------- #
def _ref_linear(x, y, w, b, adaptor=None, compute_dtype=jnp.bfloat16):
    """Pure-JAX reference with the same precision policy as the kernel."""
    w_eff = w if adaptor is None else adaptor * w
    inp = jnp.concatenate([x, y], axis=1).astype(compute_dtype)
    return jnp.dot(inp, w_eff.astype(compute_dtype).T,
                   preferred_element_type=jnp.float32) + b[None, :]


if __name__ == "__main__":
    # Small shapes: batch=4, input_dim=32 (so x, y are [4, 16]), output_dim=8.
    B, D, O = 4, 32, 8
    mod = MaskConcatFusionPallas(input_dim=D, output_dim=O,
                                 key=jax.random.PRNGKey(0))

    kx, ky = jax.random.split(jax.random.PRNGKey(1))
    x = jax.random.normal(kx, (B, D // 2), jnp.float32)
    y = jax.random.normal(ky, (B, D // 2), jnp.float32)

    # --- eval path (default forward) ---
    _, adaptor_none, out_eval = mod.forward(x, y)
    out_eval = jax.block_until_ready(out_eval)
    assert adaptor_none is None
    assert out_eval.shape == (B, O)
    ref_eval = _ref_linear(x, y, mod.fc_weight, mod.fc_bias)
    np.testing.assert_allclose(np.asarray(out_eval), np.asarray(ref_eval),
                               rtol=1e-4, atol=1e-4)

    # --- masked training path ---
    s, bias_x, bias_y = 4.0, 0.5, 0.5
    _, adaptor, out_train = mod.forward(x, y, s=s, bias_x=bias_x, bias_y=bias_y,
                                        mask_ffn=True, training=True)
    out_train = jax.block_until_ready(out_train)
    assert adaptor.shape == (O, D)
    ref_train = _ref_linear(x, y, mod.fc_weight, mod.fc_bias, adaptor=adaptor)
    np.testing.assert_allclose(np.asarray(out_train), np.asarray(ref_train),
                               rtol=1e-4, atol=1e-4)

    print("KERNEL_OK")
</pallas_src>

<mosaic_0001>
module attributes {stable_mosaic.version = 11 : i64} {
  func.func @_concat_linear_kernel(%arg0: i32, %arg1: memref<8x16xbf16, #tpu.memory_space<vmem>>, %arg2: memref<8x16xbf16, #tpu.memory_space<vmem>>, %arg3: memref<128x16xbf16, #tpu.memory_space<vmem>>, %arg4: memref<128x16xbf16, #tpu.memory_space<vmem>>, %arg5: memref<1x128xf32, #tpu.memory_space<vmem>>, %arg6: memref<8x128xf32, #tpu.memory_space<vmem>>) attributes {dimension_semantics = [#tpu.dimension_semantics<parallel>], iteration_bounds = array<i64: 1>, scalar_prefetch = 0 : i64, scratch_operands = 0 : i64, tpu.core_type = #tpu.core_type<tc>, window_params = [{transform_indices = @transform_0, window_bounds = array<i64: 8, 16>}, {transform_indices = @transform_1, window_bounds = array<i64: 8, 16>}, {pipeline_mode = #tpu.pipeline_mode<synchronous>, transform_indices = @transform_2, window_bounds = array<i64: 128, 16>}, {pipeline_mode = #tpu.pipeline_mode<synchronous>, transform_indices = @transform_3, window_bounds = array<i64: 128, 16>}, {pipeline_mode = #tpu.pipeline_mode<synchronous>, transform_indices = @transform_4, window_bounds = array<i64: 1, 128>}, {transform_indices = @transform_5, window_bounds = array<i64: 8, 128>}]} {
    %c0 = arith.constant 0 : index
    %c0_0 = arith.constant 0 : index
    %0 = vector.load %arg1[%c0, %c0_0] : memref<8x16xbf16, #tpu.memory_space<vmem>>, vector<8x16xbf16>
    %c0_1 = arith.constant 0 : index
    %c0_2 = arith.constant 0 : index
    %1 = vector.load %arg3[%c0_1, %c0_2] : memref<128x16xbf16, #tpu.memory_space<vmem>>, vector<128x16xbf16>
    %cst = arith.constant dense<0.000000e+00> : vector<8x128xf32>
    %2 = tpu.matmul %0, %1, %cst {dimension_numbers = #tpu.dot_dimension_numbers<[1], [1], [0], [0], [0, 0, 1, 0], [], []>} : vector<8x16xbf16>, vector<128x16xbf16>, vector<8x128xf32> -> vector<8x128xf32>
    %c0_3 = arith.constant 0 : index
    %c0_4 = arith.constant 0 : index
    %3 = vector.load %arg2[%c0_3, %c0_4] : memref<8x16xbf16, #tpu.memory_space<vmem>>, vector<8x16xbf16>
    %c0_5 = arith.constant 0 : index
    %c0_6 = arith.constant 0 : index
    %4 = vector.load %arg4[%c0_5, %c0_6] : memref<128x16xbf16, #tpu.memory_space<vmem>>, vector<128x16xbf16>
    %cst_7 = arith.constant dense<0.000000e+00> : vector<8x128xf32>
    %5 = tpu.matmul %3, %4, %cst_7 {dimension_numbers = #tpu.dot_dimension_numbers<[1], [1], [0], [0], [0, 0, 1, 0], [], []>} : vector<8x16xbf16>, vector<128x16xbf16>, vector<8x128xf32> -> vector<8x128xf32>
    %6 = arith.addf %2, %5 : vector<8x128xf32>
    %c0_8 = arith.constant 0 : index
    %c0_9 = arith.constant 0 : index
    %7 = vector.load %arg5[%c0_8, %c0_9] : memref<1x128xf32, #tpu.memory_space<vmem>>, vector<1x128xf32>
    %8 = vector.broadcast %7 : vector<1x128xf32> to vector<8x128xf32>
    %9 = arith.addf %6, %8 : vector<8x128xf32>
    %c0_10 = arith.constant 0 : index
    %c0_11 = arith.constant 0 : index
    %10 = vector.load %arg6[%c0_10, %c0_11] : memref<8x128xf32, #tpu.memory_space<vmem>>, vector<8x128xf32>
    tpu.vector_store %arg6[%c0_10, %c0_11], %9 {strides = array<i32>} : memref<8x128xf32, #tpu.memory_space<vmem>>, vector<8x128xf32>,
    return
  }
  func.func @transform_0(%arg0: i32) -> (i32, i32) {
    %c0_i32 = arith.constant 0 : i32
    %c0_i32_0 = arith.constant 0 : i32
    return %arg0, %c0_i32 : i32, i32
  }
  func.func @transform_1(%arg0: i32) -> (i32, i32) {
    %c0_i32 = arith.constant 0 : i32
    %c0_i32_0 = arith.constant 0 : i32
    return %arg0, %c0_i32 : i32, i32
  }
  func.func @transform_2(%arg0: i32) -> (i32, i32) {
    %c0_i32 = arith.constant 0 : i32
    %c0_i32_0 = arith.constant 0 : i32
    %c0_i32_1 = arith.constant 0 : i32
    return %c0_i32, %c0_i32_0 : i32, i32
  }
  func.func @transform_3(%arg0: i32) -> (i32, i32) {
    %c0_i32 = arith.constant 0 : i32
    %c0_i32_0 = arith.constant 0 : i32
    %c0_i32_1 = arith.constant 0 : i32
    return %c0_i32, %c0_i32_0 : i32, i32
  }
  func.func @transform_4(%arg0: i32) -> (i32, i32) {
    %c0_i32 = arith.constant 0 : i32
    %c0_i32_0 = arith.constant 0 : i32
    %c0_i32_1 = arith.constant 0 : i32
    return %c0_i32, %c0_i32_0 : i32, i32
  }
  func.func @transform_5(%arg0: i32) -> (i32, i32) {
    %c0_i32 = arith.constant 0 : i32
    %c0_i32_0 = arith.constant 0 : i32
    return %arg0, %c0_i32 : i32, i32
  }
}

</mosaic_0001>

<bundles_post_ra>
// kernel: tpu_custom_call.1
= control target key start
LH: loop header
LB: loop body
LE: loop exit
PB: predicated region body
PF: predicated region fallthrough
CT: control target
= control target key end

     0   :  { %vm95_vm0 = vcmask 130048   ;;  %s457_s0 = inlined_call_operand.vmem [shape: bf16[8,16], index: 0, kind: input, shape index: {}]   ;;  %s458_s1 = inlined_call_operand.vmem [shape: bf16[8,16], index: 1, kind: input, shape index: {}]   ;;  %s459_s2 = inlined_call_operand.vmem [shape: bf16[128,16], index: 2, kind: input, shape index: {}]   ;;  %s460_s3 = inlined_call_operand.vmem [shape: bf16[128,16], index: 3, kind: input, shape index: {}]   ;;  %s461_s4 = inlined_call_operand.vmem [shape: f32[1,128], index: 4, kind: input, shape index: {}]   ;;  %s462_s5 = inlined_call_operand.hbm [shape: f32[8,128], index: 5, kind: output, shape index: {}]  }
   0x1   :  { %v319_v0 = vld [vmem:[%s460_s3 + $0x38] sm:$0xff]  ;;  %v318_v4 = vld [vmem:[%s460_s3 + $0x30] sm:$0xff] }
   0x2   :  { %v311_v1 = vld [vmem:[%s459_s2 + $0x38] sm:$0xff]  ;;  %v121_v2 = vsel %vm95_vm0, %v319_v0, 0  ;;  %v310_v5 = vld [vmem:[%s459_s2 + $0x30] sm:$0xff] }
   0x3   :  { %v201_v3 = vsel %vm95_vm0, %v311_v1, 0  ;;  %123 = vmatpush.bf16.xpose.msra.mxu0 %v121_v2 }
   0x4   :  { %203 = vmatpush.bf16.xpose.msra.mxu1 %v201_v3 }
   0x5   :  { %10 = vsyncpa [#allocation3], 0  ;;  %v118_v6 = vsel %vm95_vm0, %v318_v4, 0  ;;  %v198_v7 = vsel %vm95_vm0, %v310_v5, 0  ;;  %v317_v8 = vld [vmem:[%s460_s3 + $0x28] sm:$0xff]  ;;  %v316_v12 = vld [vmem:[%s460_s3 + $0x20] sm:$0xff] }
   0x6   :  { %v309_v9 = vld [vmem:[%s459_s2 + $0x28] sm:$0xff]  ;;  %v115_v10 = vsel %vm95_vm0, %v317_v8, 0  ;;  %v308_v13 = vld [vmem:[%s459_s2 + $0x20] sm:$0xff]  ;;  %v112_v14 = vsel %vm95_vm0, %v316_v12, 0  ;;  %v315_v16 = vld [vmem:[%s460_s3 + $0x18] sm:$0xff]  ;;  %s348_s29 = smov [#allocation2]  }
   0x7   :  { %v195_v11 = vsel %vm95_vm0, %v309_v9, 0  ;;  %v192_v15 = vsel %vm95_vm0, %v308_v13, 0  ;;  %v307_v17 = vld [vmem:[%s459_s2 + $0x18] sm:$0xff]  ;;  %v109_v18 = vsel %vm95_vm0, %v315_v16, 0  ;;  %v314_v20 = vld [vmem:[%s460_s3 + $0x10] sm:$0xff]  ;;  %v313_v24 = vld [vmem:[%s460_s3 + $0x8] sm:$0xff] }
   0x8   :  { %v189_v19 = vsel %vm95_vm0, %v307_v17, 0  ;;  %v306_v21 = vld [vmem:[%s459_s2 + $0x10] sm:$0xff]  ;;  %v106_v22 = vsel %vm95_vm0, %v314_v20, 0  ;;  %v305_v25 = vld [vmem:[%s459_s2 + $0x8] sm:$0xff]  ;;  %v103_v26 = vsel %vm95_vm0, %v313_v24, 0  ;;  %v312_v28 = vld [vmem:[%s460_s3] sm:$0xff] }
   0x9   :  { %v186_v23 = vsel %vm95_vm0, %v306_v21, 0  ;;  %v183_v27 = vsel %vm95_vm0, %v305_v25, 0  ;;  %v304_v29 = vld [vmem:[%s459_s2] sm:$0xff]  ;;  %v100_v30 = vsel %vm95_vm0, %v312_v28, 0  ;;  %s227_s30 = sshll.u32 %s348_s29, 4  ;;  %s228_s30 = int_to_ptr.vmem [resolvable:$true] %s227_s30 }
   0xa   :  { %v180_v31 = vsel %vm95_vm0, %v304_v29, 0  ;;  %v38_v32 = vld [vmem:[%s458_s1] sm:$0xf]  ;;  %s229_s1 = sshll.u32 %s462_s5, 4  ;;  %s230_s1 = int_to_ptr.hbm [resolvable:$true] %s229_s1 }
   0xb   :  { %124 = vmatpush.bf16.xpose.msra.mxu0 %v118_v6  ;;  %v21_v33 = vld [vmem:[%s457_s0] sm:$0xf] }
   0xc   :  { %204 = vmatpush.bf16.xpose.msra.mxu1 %v198_v7  ;;  %v321_v34 = vld [vmem:[%s461_s4] ss:$0 sm:$0xff] }
  0x13   :  { %125 = vmatpush.bf16.xpose.msra.mxu0 %v115_v10 }
  0x14   :  { %205 = vmatpush.bf16.xpose.msra.mxu1 %v195_v11 }
  0x1b   :  { %126 = vmatpush.bf16.xpose.msra.mxu0 %v112_v14 }
  0x1c   :  { %206 = vmatpush.bf16.xpose.msra.mxu1 %v192_v15 }
  0x23   :  { %127 = vmatpush.bf16.xpose.msra.mxu0 %v109_v18 }
  0x24   :  { %207 = vmatpush.bf16.xpose.msra.mxu1 %v189_v19 }
  0x2b   :  { %128 = vmatpush.bf16.xpose.msra.mxu0 %v106_v22 }
  0x2c   :  { %208 = vmatpush.bf16.xpose.msra.mxu1 %v186_v23 }
  0x33   :  { %129 = vmatpush.bf16.xpose.msra.mxu0 %v103_v26 }
  0x34   :  { %209 = vmatpush.bf16.xpose.msra.mxu1 %v183_v27 }
  0x3b   :  { %130 = vmatpush.bf16.xpose.msra.mxu0 %v100_v30 }
  0x3c   :  { %210 = vmatpush.bf16.xpose.msra.mxu1 %v180_v31 }
  0x42   :  { %270 = vmatmul.msk.bf16.vlgmr.msra.gmra.mxu0 %vm95_vm0, %v38_v32 }
  0x43   :  { %303 = vmatmul.msk.bf16.vlgmr.msra.gmra.mxu1 %vm95_vm0, %v21_v33 }
  0xbf   :  { %v132_v35 = vpop.f32.mrf.mxu0 }
  0xc0   :  { %v212_v36 = vpop.f32.mrf.mxu1 }
  0xc1   :  { %v213_v37 = vadd.f32 %v212_v36, %v132_v35 }
  0xc3   :  { %v220_v38 = vadd.f32 %v321_v34, %v213_v37 }
  0xc5   :  { %221 = vst [vmem:[#allocation2] sm:$0xff] %v220_v38 }
  0xc6   :  { %232 = dma.vmem_to_hbm [thread:$0]  %s228_s30, 128, %s230_s1, [#allocation3]  }
  0xc7   :  { %v134_v39 = vpop.f32.mrf.mxu0 }
  0xc8   :  { %v214_v40 = vpop.f32.mrf.mxu1 }
  0xc9   :  { %346 = dma.done.wait [#allocation3], 128  }
  0xca   :  { %347 = vsyncadd [#allocation3], 4294967168 }
  0xcb   :  { %237 = vsyncpa [#allocation3], 1 }

</bundles_post_ra>
